<compile_context>
chip_gen: v5e
topology: v5e:2x2
jax: 0.10.0
libtpu: 0.0.40
codegen_flags: <defaults>
</compile_context>

<pallas_src>
import functools

import jax
import jax.numpy as jnp
from jax import lax
from jax.experimental import pallas as pl
from jax.experimental.pallas import tpu as pltpu
from jax.scipy.special import logsumexp


TEMPERATURE = 0.3
EPS = 1e-8                      # torch.nn.CosineSimilarity default eps
_INV_T = 1.0 / TEMPERATURE      # cos <= 1 and T = 0.3  ->  exp(cos/T) <= e^3.34, no shift needed


def _normalize_f32(x):
    # x / max(||x||, eps) == x * rsqrt(max(||x||^2, eps^2))   (EUP rsqrt, no divide)
    x = x.astype(jnp.float32)
    sq = jnp.sum(x * x, axis=-1, keepdims=True)
    return x * lax.rsqrt(jnp.maximum(sq, jnp.float32(EPS * EPS)))


def _ntxent_kernel(zr_ref, zc_ref, o_ref, *, n_chunks, acc_w):
    """One (row-block, col-block) step: fused bf16 gram + exp + lane-dense accumulate.

    zr_ref: (2*tr, D) bf16 — [z_i rows ; z_j rows] of this row block, pre-normalized,
            pre-scaled by 1/T.
    zc_ref: (2*tc, D) bf16 — [z_i cols ; z_j cols] of this column block, pre-normalized.
    o_ref : (2*tr, acc_w) f32 — resident partial sum of exp(sim/T) over the column sweep.
    """
    @pl.when(pl.program_id(1) == 0)
    def _init():
        o_ref[...] = jnp.zeros_like(o_ref)

    # Fused gram tile on the MXU: "nd,md->nm", bf16 operands, f32 accumulation.
    g = lax.dot_general(zr_ref[...], zc_ref[...], (((1,), (1,)), ((), ())),
                        preferred_element_type=jnp.float32)        # (2tr, 2tc) f32
    e = jnp.exp(g)                                                   # EUP; 1/T already folded in

    # Lane-chunked accumulation (VPU adds only; single cross-lane reduce happens
    # later in the wrapper). Chunks are 128-lane aligned, so slices are vreg views.
    acc = e[:, :acc_w]
    for t in range(1, n_chunks):
        acc = acc + e[:, t * acc_w:(t + 1) * acc_w]
    o_ref[...] += acc


def _pick_tile(n, target, mult=8):
    """Largest multiple-of-`mult` divisor of n that is <= target (else n itself)."""
    t = min(target, n)
    t -= t % mult
    while t >= mult:
        if n % t == 0:
            return t
        t -= mult
    return n


def _acc_width(two_tc):
    """Lane width of the in-kernel accumulator (a divisor of 2*tc, at most 128)."""
    if two_tc <= 128:
        return two_tc
    if two_tc % 128 == 0:
        return 128
    w = 128
    while two_tc % w:
        w -= 1
    return w


@functools.partial(jax.jit, static_argnames=("row_tile", "col_tile"))
def ntxent_loss(z_i, z_j, row_tile=None, col_tile=None):
    """NT-Xent loss via a tiled Pallas TPU kernel. z_i, z_j: (B, D)."""
    b, d = z_i.shape
    n = 2 * b
    inv_t = jnp.float32(_INV_T)

    # ---- tiny pre-pass (mem-bound, fused by XLA): normalize, fold 1/T, cast bf16 ----
    zn_i = _normalize_f32(z_i)
    zn_j = _normalize_f32(z_j)
    ri16 = (zn_i * inv_t).astype(jnp.bfloat16)      # row operands carry the 1/T scale
    rj16 = (zn_j * inv_t).astype(jnp.bfloat16)
    ci16 = zn_i.astype(jnp.bfloat16)                # column operands stay unit-norm
    cj16 = zn_j.astype(jnp.bfloat16)

    # ---- tile selection: big row tiles (arithmetic intensity), modest column tiles ----
    row_cap = max(8, (1 << 20) // max(1, d))        # keep a (2tr, D) bf16 block <= 4 MiB
    col_cap = max(8, (1 << 19) // max(1, d))        # keep a (2tc, D) bf16 block <= 2 MiB
    tr = row_tile if row_tile is not None else _pick_tile(b, min(512, row_cap))
    tc = col_tile if col_tile is not None else _pick_tile(b, min(256, col_cap), mult=64)
    grid_r, grid_c = b // tr, b // tc
    two_tr, two_tc = 2 * tr, 2 * tc
    acc_w = _acc_width(two_tc)
    n_chunks = two_tc // acc_w

    # Blocked operand layout: zr[r] = [z_i rows r*tr: ; z_j rows r*tr:], same for columns.
    zr = jnp.concatenate(
        [ri16.reshape(grid_r, tr, d), rj16.reshape(grid_r, tr, d)], axis=1)
    zc = jnp.concatenate(
        [ci16.reshape(grid_c, tc, d), cj16.reshape(grid_c, tc, d)], axis=1)

    # ---- VMEM budget: double-buffered inputs/output + gram/exp temporaries + headroom ----
    est = (2 * (two_tr * d * 2) + 2 * (two_tc * d * 2)
           + 2 * (two_tr * acc_w * 4) + 3 * (two_tr * two_tc * 4))
    try:
        cap = int(pltpu.get_tpu_info().vmem_capacity_bytes)
    except Exception:
        cap = 64 * 1024 * 1024                      # be conservative (v7x per-TC VMEM)
    vmem_limit = int(min(max(2 * est + (16 << 20), 32 << 20), (cap * 3) // 4))

    kernel = functools.partial(_ntxent_kernel, n_chunks=n_chunks, acc_w=acc_w)
    out = pl.pallas_call(
        kernel,
        out_shape=jax.ShapeDtypeStruct((grid_r, two_tr, acc_w), jnp.float32),
        grid_spec=pltpu.PrefetchScalarGridSpec(
            num_scalar_prefetch=0,
            grid=(grid_r, grid_c),
            in_specs=[
                pl.BlockSpec((None, two_tr, d), lambda r, c: (r, 0, 0)),  # row block (resident)
                pl.BlockSpec((None, two_tc, d), lambda r, c: (c, 0, 0)),  # column block (streamed)
            ],
            out_specs=pl.BlockSpec((None, two_tr, acc_w), lambda r, c: (r, 0, 0)),
        ),
        compiler_params=pltpu.CompilerParams(
            dimension_semantics=("parallel", "arbitrary"),
            vmem_limit_bytes=vmem_limit,
        ),
    )(zr, zc)

    # ---- O(N)-sized epilogue in plain JAX ----
    # Per-row sum of exp(sim/T) over ALL columns of the current row.
    sum_exp = jnp.sum(out, axis=-1)                                   # (grid_r, 2*tr)
    sum_exp = sum_exp.reshape(grid_r, 2, tr).transpose(1, 0, 2).reshape(2, b)

    # Exact self terms and positive logits, reproduced from the same bf16 operands
    # the MXU consumed (so the diagonal is removed by value, not by assuming cos==1).
    ri = ri16.astype(jnp.float32)
    rj = rj16.astype(jnp.float32)
    ci = ci16.astype(jnp.float32)
    cj = cj16.astype(jnp.float32)
    diag_i = jnp.exp(jnp.sum(ri * ci, axis=-1))                       # (B,)
    diag_j = jnp.exp(jnp.sum(rj * cj, axis=-1))
    pos_i = jnp.sum(ri * cj, axis=-1)                                 # sim(z_i, z_j)/T
    pos_j = jnp.sum(rj * ci, axis=-1)                                 # sim(z_j, z_i)/T

    lse_i = jnp.log(sum_exp[0] - diag_i)                              # logsumexp over c != r
    lse_j = jnp.log(sum_exp[1] - diag_j)
    loss = (jnp.sum(lse_i) + jnp.sum(lse_j)
            - jnp.sum(pos_i) - jnp.sum(pos_j)) / jnp.float32(n)
    return loss


def _ntxent_ref(z_i, z_j):
    """Pure-JAX f32 reference mirroring the PyTorch forward."""
    bsz = z_i.shape[0]
    nn = 2 * bsz
    z = jnp.concatenate([z_i, z_j], axis=0).astype(jnp.float32)
    zn = z / jnp.maximum(jnp.linalg.norm(z, axis=-1, keepdims=True), EPS)
    sim = (zn @ zn.T) / TEMPERATURE
    idx = jnp.arange(nn)
    pos = sim[idx, (idx + bsz) % nn]
    off_diag = ~jnp.eye(nn, dtype=bool)
    lse = logsumexp(jnp.where(off_diag, sim, -jnp.inf), axis=1)
    return jnp.sum(lse - pos) / nn


if __name__ == "__main__":
    key = jax.random.PRNGKey(0)
    k1, k2, k3, k4, k5, k6 = jax.random.split(key, 6)

    # Tolerance is bf16-matmul level (f32 accumulation); see review note on validation.
    RTOL = ATOL = 3e-2

    # 1) Tiny single-tile case.
    z_i = jax.random.normal(k1, (8, 32), dtype=jnp.float32)
    z_j = jax.random.normal(k2, (8, 32), dtype=jnp.float32)
    loss = jax.block_until_ready(ntxent_loss(z_i, z_j))
    ref = jax.block_until_ready(_ntxent_ref(z_i, z_j))
    assert jnp.isfinite(loss), "non-finite loss (case 1)"
    assert jnp.allclose(loss, ref, rtol=RTOL, atol=ATOL), (loss, ref)

    # 2) Forced 2x2 grid: exercises the multi-block accumulation along the column sweep.
    z_i2 = jax.random.normal(k3, (32, 64), dtype=jnp.float32)
    z_j2 = jax.random.normal(k4, (32, 64), dtype=jnp.float32)
    loss2 = jax.block_until_ready(ntxent_loss(z_i2, z_j2, row_tile=16, col_tile=16))
    ref2 = jax.block_until_ready(_ntxent_ref(z_i2, z_j2))
    assert jnp.isfinite(loss2), "non-finite loss (case 2)"
    assert jnp.allclose(loss2, ref2, rtol=RTOL, atol=ATOL), (loss2, ref2)

    # 3) Lane-chunked accumulator path (2*tc = 256 -> two 128-wide VPU chunks).
    z_i3 = jax.random.normal(k5, (128, 64), dtype=jnp.float32)
    z_j3 = jax.random.normal(k6, (128, 64), dtype=jnp.float32)
    loss3 = jax.block_until_ready(ntxent_loss(z_i3, z_j3))
    ref3 = jax.block_until_ready(_ntxent_ref(z_i3, z_j3))
    assert jnp.isfinite(loss3), "non-finite loss (case 3)"
    assert jnp.allclose(loss3, ref3, rtol=RTOL, atol=ATOL), (loss3, ref3)

    print("KERNEL_OK")
</pallas_src>

<mosaic_0001>
module attributes {stable_mosaic.version = 11 : i64} {
  func.func @_ntxent_kernel(%arg0: i32, %arg1: i32, %arg2: memref<1x16x32xbf16, #tpu.memory_space<vmem>>, %arg3: memref<1x16x32xbf16, #tpu.memory_space<vmem>>, %arg4: memref<1x16x16xf32, #tpu.memory_space<vmem>>) attributes {dimension_semantics = [#tpu.dimension_semantics<parallel>, #tpu.dimension_semantics<arbitrary>], iteration_bounds = array<i64: 1, 1>, scalar_prefetch = 0 : i64, scratch_operands = 0 : i64, tpu.core_type = #tpu.core_type<tc>, window_params = [{transform_indices = @transform_0, window_bounds = array<i64: 1, 16, 32>}, {transform_indices = @transform_1, window_bounds = array<i64: 1, 16, 32>}, {transform_indices = @transform_2, window_bounds = array<i64: 1, 16, 16>}]} {
    %c0_i32 = arith.constant 0 : i32
    %0 = arith.cmpi eq, %arg1, %c0_i32 : i32
    %1 = arith.extui %0 : i1 to i32
    %c0_i32_0 = arith.constant 0 : i32
    %2 = arith.cmpi ne, %1, %c0_i32_0 : i32
    scf.if %2 {
      %cst_12 = arith.constant 0.000000e+00 : f32
      %15 = vector.broadcast %cst_12 : f32 to vector<16x16xf32>
      %c0_13 = arith.constant 0 : index
      %c0_14 = arith.constant 0 : index
      %c0_15 = arith.constant 0 : index
      %16 = vector.load %arg4[%c0_13, %c0_14, %c0_15] : memref<1x16x16xf32, #tpu.memory_space<vmem>>, vector<1x16x16xf32>
      %17 = vector.shape_cast %16 : vector<1x16x16xf32> to vector<16x16xf32>
      %18 = vector.shape_cast %15 : vector<16x16xf32> to vector<1x16x16xf32>
      tpu.vector_store %arg4[%c0_13, %c0_14, %c0_15], %18 {strides = array<i32>} : memref<1x16x16xf32, #tpu.memory_space<vmem>>, vector<1x16x16xf32>,
    } else {
    }
    %c0 = arith.constant 0 : index
    %c0_1 = arith.constant 0 : index
    %c0_2 = arith.constant 0 : index
    %3 = vector.load %arg2[%c0, %c0_1, %c0_2] : memref<1x16x32xbf16, #tpu.memory_space<vmem>>, vector<1x16x32xbf16>
    %4 = vector.shape_cast %3 : vector<1x16x32xbf16> to vector<16x32xbf16>
    %c0_3 = arith.constant 0 : index
    %c0_4 = arith.constant 0 : index
    %c0_5 = arith.constant 0 : index
    %5 = vector.load %arg3[%c0_3, %c0_4, %c0_5] : memref<1x16x32xbf16, #tpu.memory_space<vmem>>, vector<1x16x32xbf16>
    %6 = vector.shape_cast %5 : vector<1x16x32xbf16> to vector<16x32xbf16>
    %cst = arith.constant dense<0.000000e+00> : vector<16x16xf32>
    %7 = tpu.matmul %4, %6, %cst {dimension_numbers = #tpu.dot_dimension_numbers<[1], [1], [0], [0], [0, 0, 1, 0], [], []>} : vector<16x32xbf16>, vector<16x32xbf16>, vector<16x16xf32> -> vector<16x16xf32>
    %8 = math.exp %7 : vector<16x16xf32>
    %c0_6 = arith.constant 0 : index
    %c0_7 = arith.constant 0 : index
    %c0_8 = arith.constant 0 : index
    %9 = vector.load %arg4[%c0_6, %c0_7, %c0_8] : memref<1x16x16xf32, #tpu.memory_space<vmem>>, vector<1x16x16xf32>
    %10 = vector.shape_cast %9 : vector<1x16x16xf32> to vector<16x16xf32>
    %11 = arith.addf %10, %8 : vector<16x16xf32>
    %c0_9 = arith.constant 0 : index
    %c0_10 = arith.constant 0 : index
    %c0_11 = arith.constant 0 : index
    %12 = vector.load %arg4[%c0_9, %c0_10, %c0_11] : memref<1x16x16xf32, #tpu.memory_space<vmem>>, vector<1x16x16xf32>
    %13 = vector.shape_cast %12 : vector<1x16x16xf32> to vector<16x16xf32>
    %14 = vector.shape_cast %11 : vector<16x16xf32> to vector<1x16x16xf32>
    tpu.vector_store %arg4[%c0_9, %c0_10, %c0_11], %14 {strides = array<i32>} : memref<1x16x16xf32, #tpu.memory_space<vmem>>, vector<1x16x16xf32>,
    return
  }
  func.func @transform_0(%arg0: i32, %arg1: i32) -> (i32, i32, i32) {
    %c0_i32 = arith.constant 0 : i32
    %c0_i32_0 = arith.constant 0 : i32
    %c0_i32_1 = arith.constant 0 : i32
    return %arg0, %c0_i32, %c0_i32_0 : i32, i32, i32
  }
  func.func @transform_1(%arg0: i32, %arg1: i32) -> (i32, i32, i32) {
    %c0_i32 = arith.constant 0 : i32
    %c0_i32_0 = arith.constant 0 : i32
    %c0_i32_1 = arith.constant 0 : i32
    return %arg1, %c0_i32, %c0_i32_0 : i32, i32, i32
  }
  func.func @transform_2(%arg0: i32, %arg1: i32) -> (i32, i32, i32) {
    %c0_i32 = arith.constant 0 : i32
    %c0_i32_0 = arith.constant 0 : i32
    %c0_i32_1 = arith.constant 0 : i32
    return %arg0, %c0_i32, %c0_i32_0 : i32, i32, i32
  }
}

</mosaic_0001>

<bundles_post_ra>
// kernel: ntxent_loss.1
= control target key start
LH: loop header
LB: loop body
LE: loop exit
PB: predicated region body
PF: predicated region fallthrough
CT: control target
= control target key end

     0   :  { %vm33_vm0 = vcmask 261120   ;;  %vm16_vm1 = vcmask 130048   ;;  %v85_v1 = vmov 0.0   ;;  %s129_s1 = inlined_call_operand.vmem [shape: bf16[1,16,32], index: 1, kind: input, shape index: {}]   ;;  %s130_s2 = inlined_call_operand.vmem [shape: f32[1,16,16], index: 2, kind: output, shape index: {}]   ;;  %s131_s0 = inlined_call_operand.vmem [shape: bf16[1,16,32], index: 0, kind: input, shape index: {}]  }
   0x1   :  { %v79_v0 = vld [vmem:[%s129_s1] sm:$0xff]  ;;  %17 = vst.msk [vmem:[%s130_s2] sm:$0xff] %vm16_vm1, %v85_v1 }
   0x2   :  { %18 = vst.msk [vmem:[%s130_s2 + $0x8] sm:$0xff] %vm16_vm1, %v85_v1  ;;  %v38_v2 = vsel %vm33_vm0, %v79_v0, 0  ;;  %v78_v3 = vld [vmem:[%s131_s0] sm:$0xff] }
   0x3   :  { %47 = vmatpush.bf16.xpose.msra.mxu0 %v38_v2 }
   0x8   :  { %v58_v6 = vld [vmem:[%s130_s2] sm:$0xff] }
   0x9   :  { %v59_v11 = vld [vmem:[%s130_s2 + $0x8] sm:$0xff] }
   0xa   :  { %77 = vmatmul.msk.bf16.vlgmr.msra.gmra.mxu0 %vm33_vm0, %v78_v3 }
  0x87   :  { %v49_v4 = vpop.f32.mrf.mxu0 }
  0x88   :  { %v54_v5 = vmul.f32 1.442695, %v49_v4 }
  0x8a   :  { %81 = vpow2.f32 %v54_v5 }
  0x8f   :  { %v51_v7 = vpop.f32.mrf.mxu0 }
  0x90   :  { %v82_v8 = vpop.eup %81  ;;  %v56_v9 = vmul.f32 1.442695, %v51_v7 }
  0x91   :  { %v60_v10 = vadd.f32 %v82_v8, %v58_v6 }
  0x92   :  { %83 = vpow2.f32 %v56_v9 }
  0x93   :  { %63 = vst.msk [vmem:[%s130_s2] sm:$0xff] %vm16_vm1, %v60_v10 }
  0x98   :  { %v84_v12 = vpop.eup %83 }
  0x99   :  { %v61_v13 = vadd.f32 %v84_v12, %v59_v11 }
  0x9b   :  { %64 = vst.msk [vmem:[%s130_s2 + $0x8] sm:$0xff] %vm16_vm1, %v61_v13 }

</bundles_post_ra>
